<compile_context>
chip_gen: v5e
topology: v5e:2x2
jax: 0.10.0
libtpu: 0.0.40
codegen_flags: <defaults>
</compile_context>

<pallas_src>
import numpy as np
import jax
import jax.numpy as jnp
from jax import lax
from jax.experimental import pallas as pl
from jax.experimental.pallas import tpu as pltpu

# shapes from the module docstring: Q/K/V = [1, 8, 5, 64]
BATCH   = 1
N_HEADS = 8
SEQ_LEN = 5
D_K     = 64
D_V     = 64

MASK_FILL      = -1e9    # matches torch masked_fill_(attn_mask, -1e9)
OFF_BLOCK_FILL = -1e30   # cross-head fill: exp() underflows to exactly 0.0


# ------------------------------ Pallas kernel ---------------------------------
def _make_sdpa_kernel(n_groups: int, seq_len: int, d_k: int):
    """Kernel for the flattened (n_groups*seq_len, d) block-diagonal problem."""
    BHS = n_groups * seq_len
    scale = 1.0 / float(np.sqrt(d_k))

    def _head_id(idx):
        # idx // seq_len, computed as a sum of step functions so we only use
        # iota / compare / add (guaranteed-supported vector ops).
        h = jnp.zeros_like(idx)
        for g in range(1, n_groups):
            h = h + (idx >= g * seq_len).astype(jnp.int32)
        return h

    def kernel(q_ref, k_ref, v_ref, mask_ref, ctx_ref, attn_ref):
        q  = q_ref[...]          # (BHS, d_k)
        k  = k_ref[...]          # (BHS, d_k)
        v  = v_ref[...]          # (BHS, d_v)
        um = mask_ref[...]       # (BHS, S)  1.0 where the key position is masked

        # --- scores: ONE flat (BHS, d_k) x (d_k, BHS) MXU pass -----------------
        scores = lax.dot_general(q, k, (((1,), (1,)), ((), ())),
                                 preferred_element_type=jnp.float32)

        # --- block-diagonal (same-head) structure, built in-kernel from iota ---
        r_idx = lax.broadcasted_iota(jnp.int32, (BHS, BHS), 0)
        c_idx = lax.broadcasted_iota(jnp.int32, (BHS, BHS), 1)
        off_block = _head_id(r_idx) != _head_id(c_idx)

        # --- expand user mask (BHS, S) -> (BHS, BHS) with an exact one-hot matmul
        cj     = lax.broadcasted_iota(jnp.int32, (seq_len, BHS), 1)
        jrow   = lax.broadcasted_iota(jnp.int32, (seq_len, BHS), 0)
        within = cj - seq_len * _head_id(cj)              # key index within its head
        onehot = (within == jrow).astype(jnp.float32)     # (S, BHS), exact 0/1
        um_full = lax.dot_general(um, onehot, (((1,), (0,)), ((), ())),
                                  preferred_element_type=jnp.float32)

        scores = jnp.where(um_full > 0.5, MASK_FILL, scores * scale)
        scores = jnp.where(off_block, OFF_BLOCK_FILL, scores)

        # --- numerically-stable softmax over the key axis ----------------------
        m = jnp.max(scores, axis=-1, keepdims=True)
        e = jnp.exp(scores - m)                            # off-block -> exactly 0
        l = jnp.sum(e, axis=-1, keepdims=True)
        attn = e * pl.reciprocal(l, approx=True)

        attn_ref[...] = attn                               # one contiguous slab
        ctx_ref[...]  = lax.dot_general(attn, v, (((1,), (0,)), ((), ())),
                                        preferred_element_type=jnp.float32)

    return kernel


# --------------------------------- wrapper -------------------------------------
def scaled_dot_product_attention(Q, K, V, attn_mask):
    """Q, K: (B, H, S, d_k); V: (B, H, S, d_v); attn_mask: bool broadcastable
    to (B, H, S, S), True = masked.  Returns (context, attn)."""
    B, H, S, Dk = Q.shape
    Dv = V.shape[-1]
    BH = B * H
    BHS = BH * S

    q2 = Q.reshape(BHS, Dk).astype(jnp.float32)
    k2 = K.reshape(BHS, Dk).astype(jnp.float32)
    v2 = V.reshape(BHS, Dv).astype(jnp.float32)
    um = (jnp.broadcast_to(attn_mask, (B, H, S, S))
             .reshape(BHS, S).astype(jnp.float32))         # compact mask, ~800 B

    kernel = _make_sdpa_kernel(BH, S, Dk)

    flops = 2 * BHS * Dk * BHS + 2 * BHS * BHS * Dv + 2 * BHS * S * BHS
    bytes_accessed = 4 * (3 * BHS * Dk + BHS * S + BHS * Dv + BHS * BHS)

    def vmem_spec():
        return pl.BlockSpec(memory_space=pltpu.MemorySpace.VMEM)

    ctx_flat, attn_flat = pl.pallas_call(
        kernel,
        in_specs=[vmem_spec() for _ in range(4)],
        out_specs=[vmem_spec() for _ in range(2)],
        out_shape=[jax.ShapeDtypeStruct((BHS, Dv), jnp.float32),
                   jax.ShapeDtypeStruct((BHS, BHS), jnp.float32)],
        cost_estimate=pl.CostEstimate(flops=flops,
                                      transcendentals=BHS * BHS + BHS,
                                      bytes_accessed=bytes_accessed),
    )(q2, k2, v2, um)

    # layout plumbing (outside the kernel): pull each head's diagonal block out
    # of the (BHS, BHS) attention slab.
    ctx = ctx_flat.reshape(B, H, S, Dv)
    hid = jnp.arange(BH)
    attn = attn_flat.reshape(BH, S, BH, S)[hid, :, hid, :].reshape(B, H, S, S)
    return ctx, attn


# -------------------------- pure-JAX reference ----------------------------------
def sdpa_reference(Q, K, V, attn_mask):
    dk = Q.shape[-1]
    scores = jnp.einsum('bhqd,bhkd->bhqk', Q, K) / np.sqrt(dk)
    scores = jnp.where(attn_mask, MASK_FILL, scores)
    attn = jax.nn.softmax(scores, axis=-1)
    ctx = jnp.einsum('bhqk,bhkd->bhqd', attn, V)
    return ctx, attn


# ----------------------------------- main ---------------------------------------
if __name__ == "__main__":
    key = jax.random.PRNGKey(0)
    kq, kk, kv = jax.random.split(key, 3)
    Q = jax.random.normal(kq, (BATCH, N_HEADS, SEQ_LEN, D_K), jnp.float32)
    K = jax.random.normal(kk, (BATCH, N_HEADS, SEQ_LEN, D_K), jnp.float32)
    V = jax.random.normal(kv, (BATCH, N_HEADS, SEQ_LEN, D_V), jnp.float32)

    # padding-style mask (as produced by get_attn_pad_mask in the original code):
    # the last key position is padding -> masked for every query / head.
    key_is_pad = jnp.array([False, False, False, False, True])
    attn_mask = jnp.broadcast_to(key_is_pad[None, None, None, :],
                                 (BATCH, N_HEADS, SEQ_LEN, SEQ_LEN))

    ctx, attn = scaled_dot_product_attention(Q, K, V, attn_mask)
    jax.block_until_ready((ctx, attn))

    # correctness check against a pure-JAX reference
    ref_ctx, ref_attn = sdpa_reference(Q, K, V, attn_mask)
    assert ctx.shape == (BATCH, N_HEADS, SEQ_LEN, D_V)
    assert attn.shape == (BATCH, N_HEADS, SEQ_LEN, SEQ_LEN)
    assert bool(jnp.all(jnp.isfinite(ctx)))
    assert bool(jnp.all(jnp.isfinite(attn)))
    np.testing.assert_allclose(np.asarray(attn), np.asarray(ref_attn),
                               rtol=1e-2, atol=1e-2)
    np.testing.assert_allclose(np.asarray(ctx), np.asarray(ref_ctx),
                               rtol=1e-2, atol=1e-2)

    print("KERNEL_OK")
</pallas_src>

<mosaic_0001>
module attributes {stable_mosaic.version = 11 : i64} {
  func.func @kernel(%arg0: memref<40x64xf32, #tpu.memory_space<vmem>>, %arg1: memref<40x64xf32, #tpu.memory_space<vmem>>, %arg2: memref<40x64xf32, #tpu.memory_space<vmem>>, %arg3: memref<40x5xf32, #tpu.memory_space<vmem>>, %arg4: memref<40x64xf32, #tpu.memory_space<vmem>>, %arg5: memref<40x40xf32, #tpu.memory_space<vmem>>) attributes {dimension_semantics = [], scalar_prefetch = 0 : i64, scratch_operands = 0 : i64, tpu.core_type = #tpu.core_type<tc>} {
    %c0 = arith.constant 0 : index
    %c0_0 = arith.constant 0 : index
    %0 = vector.load %arg0[%c0, %c0_0] : memref<40x64xf32, #tpu.memory_space<vmem>>, vector<40x64xf32>
    %c0_1 = arith.constant 0 : index
    %c0_2 = arith.constant 0 : index
    %1 = vector.load %arg1[%c0_1, %c0_2] : memref<40x64xf32, #tpu.memory_space<vmem>>, vector<40x64xf32>
    %c0_3 = arith.constant 0 : index
    %c0_4 = arith.constant 0 : index
    %2 = vector.load %arg2[%c0_3, %c0_4] : memref<40x64xf32, #tpu.memory_space<vmem>>, vector<40x64xf32>
    %c0_5 = arith.constant 0 : index
    %c0_6 = arith.constant 0 : index
    %3 = vector.load %arg3[%c0_5, %c0_6] : memref<40x5xf32, #tpu.memory_space<vmem>>, vector<40x5xf32>
    %cst = arith.constant dense<0.000000e+00> : vector<40x40xf32>
    %4 = tpu.matmul %0, %1, %cst {dimension_numbers = #tpu.dot_dimension_numbers<[1], [1], [0], [0], [0, 0, 1, 0], [], []>} : vector<40x64xf32>, vector<40x64xf32>, vector<40x40xf32> -> vector<40x40xf32>
    %5 = tpu.iota {dimensions = array<i32: 0>} : vector<40x40xi32>
    %6 = tpu.iota {dimensions = array<i32: 1>} : vector<40x40xi32>
    %c0_i32 = arith.constant 0 : i32
    %7 = vector.broadcast %c0_i32 : i32 to vector<40x40xi32>
    %c5_i32 = arith.constant 5 : i32
    %8 = vector.broadcast %c5_i32 : i32 to vector<40x40xi32>
    %9 = arith.cmpi sge, %5, %8 : vector<40x40xi32>
    %10 = arith.extui %9 : vector<40x40xi1> to vector<40x40xi32>
    %11 = arith.addi %7, %10 : vector<40x40xi32>
    %c10_i32 = arith.constant 10 : i32
    %12 = vector.broadcast %c10_i32 : i32 to vector<40x40xi32>
    %13 = arith.cmpi sge, %5, %12 : vector<40x40xi32>
    %14 = arith.extui %13 : vector<40x40xi1> to vector<40x40xi32>
    %15 = arith.addi %11, %14 : vector<40x40xi32>
    %c15_i32 = arith.constant 15 : i32
    %16 = vector.broadcast %c15_i32 : i32 to vector<40x40xi32>
    %17 = arith.cmpi sge, %5, %16 : vector<40x40xi32>
    %18 = arith.extui %17 : vector<40x40xi1> to vector<40x40xi32>
    %19 = arith.addi %15, %18 : vector<40x40xi32>
    %c20_i32 = arith.constant 20 : i32
    %20 = vector.broadcast %c20_i32 : i32 to vector<40x40xi32>
    %21 = arith.cmpi sge, %5, %20 : vector<40x40xi32>
    %22 = arith.extui %21 : vector<40x40xi1> to vector<40x40xi32>
    %23 = arith.addi %19, %22 : vector<40x40xi32>
    %c25_i32 = arith.constant 25 : i32
    %24 = vector.broadcast %c25_i32 : i32 to vector<40x40xi32>
    %25 = arith.cmpi sge, %5, %24 : vector<40x40xi32>
    %26 = arith.extui %25 : vector<40x40xi1> to vector<40x40xi32>
    %27 = arith.addi %23, %26 : vector<40x40xi32>
    %c30_i32 = arith.constant 30 : i32
    %28 = vector.broadcast %c30_i32 : i32 to vector<40x40xi32>
    %29 = arith.cmpi sge, %5, %28 : vector<40x40xi32>
    %30 = arith.extui %29 : vector<40x40xi1> to vector<40x40xi32>
    %31 = arith.addi %27, %30 : vector<40x40xi32>
    %c35_i32 = arith.constant 35 : i32
    %32 = vector.broadcast %c35_i32 : i32 to vector<40x40xi32>
    %33 = arith.cmpi sge, %5, %32 : vector<40x40xi32>
    %34 = arith.extui %33 : vector<40x40xi1> to vector<40x40xi32>
    %35 = arith.addi %31, %34 : vector<40x40xi32>
    %c0_i32_7 = arith.constant 0 : i32
    %36 = vector.broadcast %c0_i32_7 : i32 to vector<40x40xi32>
    %c5_i32_8 = arith.constant 5 : i32
    %37 = vector.broadcast %c5_i32_8 : i32 to vector<40x40xi32>
    %38 = arith.cmpi sge, %6, %37 : vector<40x40xi32>
    %39 = arith.extui %38 : vector<40x40xi1> to vector<40x40xi32>
    %40 = arith.addi %36, %39 : vector<40x40xi32>
    %c10_i32_9 = arith.constant 10 : i32
    %41 = vector.broadcast %c10_i32_9 : i32 to vector<40x40xi32>
    %42 = arith.cmpi sge, %6, %41 : vector<40x40xi32>
    %43 = arith.extui %42 : vector<40x40xi1> to vector<40x40xi32>
    %44 = arith.addi %40, %43 : vector<40x40xi32>
    %c15_i32_10 = arith.constant 15 : i32
    %45 = vector.broadcast %c15_i32_10 : i32 to vector<40x40xi32>
    %46 = arith.cmpi sge, %6, %45 : vector<40x40xi32>
    %47 = arith.extui %46 : vector<40x40xi1> to vector<40x40xi32>
    %48 = arith.addi %44, %47 : vector<40x40xi32>
    %c20_i32_11 = arith.constant 20 : i32
    %49 = vector.broadcast %c20_i32_11 : i32 to vector<40x40xi32>
    %50 = arith.cmpi sge, %6, %49 : vector<40x40xi32>
    %51 = arith.extui %50 : vector<40x40xi1> to vector<40x40xi32>
    %52 = arith.addi %48, %51 : vector<40x40xi32>
    %c25_i32_12 = arith.constant 25 : i32
    %53 = vector.broadcast %c25_i32_12 : i32 to vector<40x40xi32>
    %54 = arith.cmpi sge, %6, %53 : vector<40x40xi32>
    %55 = arith.extui %54 : vector<40x40xi1> to vector<40x40xi32>
    %56 = arith.addi %52, %55 : vector<40x40xi32>
    %c30_i32_13 = arith.constant 30 : i32
    %57 = vector.broadcast %c30_i32_13 : i32 to vector<40x40xi32>
    %58 = arith.cmpi sge, %6, %57 : vector<40x40xi32>
    %59 = arith.extui %58 : vector<40x40xi1> to vector<40x40xi32>
    %60 = arith.addi %56, %59 : vector<40x40xi32>
    %c35_i32_14 = arith.constant 35 : i32
    %61 = vector.broadcast %c35_i32_14 : i32 to vector<40x40xi32>
    %62 = arith.cmpi sge, %6, %61 : vector<40x40xi32>
    %63 = arith.extui %62 : vector<40x40xi1> to vector<40x40xi32>
    %64 = arith.addi %60, %63 : vector<40x40xi32>
    %65 = arith.cmpi ne, %35, %64 : vector<40x40xi32>
    %66 = tpu.iota {dimensions = array<i32: 1>} : vector<5x40xi32>
    %67 = tpu.iota {dimensions = array<i32: 0>} : vector<5x40xi32>
    %c0_i32_15 = arith.constant 0 : i32
    %68 = vector.broadcast %c0_i32_15 : i32 to vector<5x40xi32>
    %c5_i32_16 = arith.constant 5 : i32
    %69 = vector.broadcast %c5_i32_16 : i32 to vector<5x40xi32>
    %70 = arith.cmpi sge, %66, %69 : vector<5x40xi32>
    %71 = arith.extui %70 : vector<5x40xi1> to vector<5x40xi32>
    %72 = arith.addi %68, %71 : vector<5x40xi32>
    %c10_i32_17 = arith.constant 10 : i32
    %73 = vector.broadcast %c10_i32_17 : i32 to vector<5x40xi32>
    %74 = arith.cmpi sge, %66, %73 : vector<5x40xi32>
    %75 = arith.extui %74 : vector<5x40xi1> to vector<5x40xi32>
    %76 = arith.addi %72, %75 : vector<5x40xi32>
    %c15_i32_18 = arith.constant 15 : i32
    %77 = vector.broadcast %c15_i32_18 : i32 to vector<5x40xi32>
    %78 = arith.cmpi sge, %66, %77 : vector<5x40xi32>
    %79 = arith.extui %78 : vector<5x40xi1> to vector<5x40xi32>
    %80 = arith.addi %76, %79 : vector<5x40xi32>
    %c20_i32_19 = arith.constant 20 : i32
    %81 = vector.broadcast %c20_i32_19 : i32 to vector<5x40xi32>
    %82 = arith.cmpi sge, %66, %81 : vector<5x40xi32>
    %83 = arith.extui %82 : vector<5x40xi1> to vector<5x40xi32>
    %84 = arith.addi %80, %83 : vector<5x40xi32>
    %c25_i32_20 = arith.constant 25 : i32
    %85 = vector.broadcast %c25_i32_20 : i32 to vector<5x40xi32>
    %86 = arith.cmpi sge, %66, %85 : vector<5x40xi32>
    %87 = arith.extui %86 : vector<5x40xi1> to vector<5x40xi32>
    %88 = arith.addi %84, %87 : vector<5x40xi32>
    %c30_i32_21 = arith.constant 30 : i32
    %89 = vector.broadcast %c30_i32_21 : i32 to vector<5x40xi32>
    %90 = arith.cmpi sge, %66, %89 : vector<5x40xi32>
    %91 = arith.extui %90 : vector<5x40xi1> to vector<5x40xi32>
    %92 = arith.addi %88, %91 : vector<5x40xi32>
    %c35_i32_22 = arith.constant 35 : i32
    %93 = vector.broadcast %c35_i32_22 : i32 to vector<5x40xi32>
    %94 = arith.cmpi sge, %66, %93 : vector<5x40xi32>
    %95 = arith.extui %94 : vector<5x40xi1> to vector<5x40xi32>
    %96 = arith.addi %92, %95 : vector<5x40xi32>
    %c5_i32_23 = arith.constant 5 : i32
    %97 = vector.broadcast %c5_i32_23 : i32 to vector<5x40xi32>
    %98 = arith.muli %97, %96 : vector<5x40xi32>
    %99 = arith.subi %66, %98 : vector<5x40xi32>
    %100 = arith.cmpi eq, %99, %67 : vector<5x40xi32>
    %101 = arith.extui %100 : vector<5x40xi1> to vector<5x40xi32>
    %102 = arith.sitofp %101 : vector<5x40xi32> to vector<5x40xf32>
    %cst_24 = arith.constant dense<0.000000e+00> : vector<40x40xf32>
    %103 = tpu.matmul %3, %102, %cst_24 {dimension_numbers = #tpu.dot_dimension_numbers<[1], [0], [0], [1], [0, 0, 1, 1], [], []>} : vector<40x5xf32>, vector<5x40xf32>, vector<40x40xf32> -> vector<40x40xf32>
    %cst_25 = arith.constant 5.000000e-01 : f32
    %104 = vector.broadcast %cst_25 : f32 to vector<40x40xf32>
    %105 = arith.cmpf ogt, %103, %104 : vector<40x40xf32>
    %cst_26 = arith.constant 1.250000e-01 : f32
    %106 = vector.broadcast %cst_26 : f32 to vector<40x40xf32>
    %107 = arith.mulf %4, %106 : vector<40x40xf32>
    %cst_27 = arith.constant -1.000000e+09 : f32
    %108 = vector.broadcast %cst_27 : f32 to vector<40x40xf32>
    %109 = arith.select %105, %108, %107 : vector<40x40xi1>, vector<40x40xf32>
    %cst_28 = arith.constant -1.000000e+30 : f32
    %110 = vector.broadcast %cst_28 : f32 to vector<40x40xf32>
    %111 = arith.select %65, %110, %109 : vector<40x40xi1>, vector<40x40xf32>
    %cst_29 = arith.constant dense<0xFF800000> : vector<40xf32>
    %112 = vector.multi_reduction <maximumf>, %111, %cst_29 [1] : vector<40x40xf32> to vector<40xf32>
    %113 = vector.shape_cast %112 : vector<40xf32> to vector<40x1xf32>
    %114 = vector.broadcast %113 : vector<40x1xf32> to vector<40x40xf32>
    %115 = arith.subf %111, %114 : vector<40x40xf32>
    %116 = math.exp %115 : vector<40x40xf32>
    %cst_30 = arith.constant dense<0.000000e+00> : vector<40xf32>
    %117 = vector.multi_reduction <add>, %116, %cst_30 [1] : vector<40x40xf32> to vector<40xf32>
    %118 = vector.shape_cast %117 : vector<40xf32> to vector<40x1xf32>
    %119 = tpu.reciprocal %118 {approx = true} : vector<40x1xf32> -> vector<40x1xf32>
    %120 = vector.broadcast %119 : vector<40x1xf32> to vector<40x40xf32>
    %121 = arith.mulf %116, %120 : vector<40x40xf32>
    %c0_31 = arith.constant 0 : index
    %c0_32 = arith.constant 0 : index
    %122 = vector.load %arg5[%c0_31, %c0_32] : memref<40x40xf32, #tpu.memory_space<vmem>>, vector<40x40xf32>
    tpu.vector_store %arg5[%c0_31, %c0_32], %121 {strides = array<i32>} : memref<40x40xf32, #tpu.memory_space<vmem>>, vector<40x40xf32>,
    %cst_33 = arith.constant dense<0.000000e+00> : vector<40x64xf32>
    %123 = tpu.matmul %121, %2, %cst_33 {dimension_numbers = #tpu.dot_dimension_numbers<[1], [0], [0], [1], [0, 0, 1, 1], [], []>} : vector<40x40xf32>, vector<40x64xf32>, vector<40x64xf32> -> vector<40x64xf32>
    %c0_34 = arith.constant 0 : index
    %c0_35 = arith.constant 0 : index
    %124 = vector.load %arg4[%c0_34, %c0_35] : memref<40x64xf32, #tpu.memory_space<vmem>>, vector<40x64xf32>
    tpu.vector_store %arg4[%c0_34, %c0_35], %123 {strides = array<i32>} : memref<40x64xf32, #tpu.memory_space<vmem>>, vector<40x64xf32>,
    return
  }
}

</mosaic_0001>

<bundles_post_ra>
// kernel: tpu_custom_call.1
= control target key start
LH: loop header
LB: loop body
LE: loop exit
PB: predicated region body
PF: predicated region fallthrough
CT: control target
= control target key end

     0   :  { %11 = vsyncpa [#allocation3], 0  ;;  %s823_s0 = inlined_call_operand.vmem [shape: f32[40,64], index: 0, kind: input, shape index: {}]   ;;  %s824_s1 = inlined_call_operand.hbm [shape: f32[40,64], index: 1, kind: input, shape index: {}]   ;;  %s825_s2 = inlined_call_operand.hbm [shape: f32[40,64], index: 2, kind: input, shape index: {}]   ;;  %s826_s3 = inlined_call_operand.vmem [shape: f32[40,5], index: 3, kind: input, shape index: {}]   ;;  %s827_s4 = inlined_call_operand.hbm [shape: f32[40,64], index: 4, kind: output, shape index: {0}]   ;;  %s828_s5 = inlined_call_operand.hbm [shape: f32[40,40], index: 5, kind: output, shape index: {1}]  }
   0x1   :  { %12 = vsyncpa [#allocation6], 0 }
   0x2   :  { %13 = vsyncpa [#allocation4], 0 }
   0x3   :  { %14 = vsyncpa [#allocation9], 0  ;;  %s21_s20 = sshll.u32 %s824_s1, 4  ;;  %s656_s21 = smov [#allocation2]   ;;  %s22_s20 = int_to_ptr.hbm [resolvable:$true] %s21_s20 }
   0x4   :  { %s23_s22 = sshll.u32 %s656_s21, 4  ;;  %s34_s25 = sshll.u32 %s825_s2, 4  ;;  %s24_s22 = int_to_ptr.vmem [resolvable:$true] %s23_s22  ;;  %s35_s25 = int_to_ptr.hbm [resolvable:$true] %s34_s25 }
   0x5   :  { %s657_s26 = smov 128   ;;  %s658_s27 = smov 8  }
   0x6   :  { %29 = dma.hbm_to_vmem [thread:$0]  %s22_s20, 640, %s24_s22, [#allocation3], %s657_s26, %s657_s26, %s658_s27  }
   0x7   :  { %s659_s28 = smov [#allocation5]  }
   0x8   :  { %s36_s29 = sshll.u32 %s659_s28, 4  ;;  %s37_s29 = int_to_ptr.vmem [resolvable:$true] %s36_s29 }
   0x9   :  { %42 = dma.hbm_to_vmem [thread:$0]  %s35_s25, 640, %s37_s29, [#allocation6], %s657_s26, %s657_s26, %s658_s27  }
   0xa   :  { %648 = dma.done.wait [#allocation3], 640  }
   0xb   :  { %649 = vsyncadd [#allocation3], 4294966656 }
   0xc   :  { %650 = dma.done.wait [#allocation6], 640  }
   0xd   :  { %651 = vsyncadd [#allocation6], 4294966656  ;;  %v136_v0 = vlaneseq  ;;  %vm73_vm4 = vcmask 523264   ;;  %v660_v2 = vmov 0   ;;  %v62_v7 = vld [vmem:[#allocation2 + $0x20] sm:$0xff]  ;;  %v61_v10 = vld [vmem:[#allocation2 + $0x18] sm:$0xff] }
   0xe   :  { %497 = vmatpush.xpose.msk.msra.mxu0 %vm73_vm4, %v62_v7  ;;  %519 = vmatpush.xpose.msk.msra.mxu3 %vm73_vm4, %v62_v7  ;;  %v60_v15 = vld [vmem:[#allocation2 + $0x10] sm:$0xff]  ;;  %v59_v19 = vld [vmem:[#allocation2 + $0x8] sm:$0xff]  ;;  %v58_v23 = vld [vmem:[#allocation2] sm:$0xff]  ;;  %vm290_vm8 = vcmask 1044480   ;;  %vm274_vm10 = vcmask 39936   ;;  %v661_v25 = vmov 0.0  }
   0xf   :  { %v143_v1 = vand.u32 127, %v136_v0  ;;  %v721_v20 = vshrl.u32 %v136_v0, 7  ;;  %v68_v24 = vld [vmem:[%s826_s3] sm:$0xff]  ;;  %v56_v28 = vld [vmem:[%s823_s0 + $0x18] sm:$0xff]  ;;  %v69_v29 = vld [vmem:[%s826_s3 + $0x8] sm:$0xff]  ;;  %s478_s25 = sshll.u32 %s828_s5, 4  ;;  %s479_s25 = int_to_ptr.hbm [resolvable:$true] %s478_s25 }
  0x10   :  { %v53_v27 = vld [vmem:[%s823_s0] sm:$0xff]  ;;  %v54_v30 = vld [vmem:[%s823_s0 + $0x8] sm:$0xff]  ;;  %v70_v32 = vld [vmem:[%s826_s3 + $0x10] sm:$0xff]  ;;  %s663_s28 = smov [#allocation7]   ;;  %s465_s2 = sshll.u32 %s827_s4, 4  ;;  %s466_s2 = int_to_ptr.hbm [resolvable:$true] %s465_s2 }
  0x11   :  { %vm244_vm0 = vcmp.ge.s32.totalorder %v143_v1, 5  ;;  %vm246_vm1 = vcmp.ge.s32.totalorder %v143_v1, 10  ;;  %vm249_vm2 = vcmp.ge.s32.totalorder %v143_v1, 15  ;;  %vm252_vm3 = vcmp.ge.s32.totalorder %v143_v1, 20  ;;  %v57_v31 = vld [vmem:[%s823_s0 + $0x20] sm:$0xff]  ;;  %v55_v33 = vld [vmem:[%s823_s0 + $0x10] sm:$0xff] }
  0x12   :  { %v245_v3 = vsel %vm244_vm0, 1, %v660_v2  ;;  %v247_v4 = vsel %vm246_vm1, 1, %v660_v2  ;;  %v250_v5 = vsel %vm249_vm2, 1, %v660_v2  ;;  %vm255_vm5 = vcmp.ge.s32.totalorder %v143_v1, 25  ;;  %498 = vmatpush.xpose.msk.msra.mxu0 %vm73_vm4, %v61_v10  ;;  %520 = vmatpush.xpose.msk.msra.mxu3 %vm73_vm4, %v61_v10  ;;  %v71_v34 = vld [vmem:[%s826_s3 + $0x18] sm:$0xff]  ;;  %v72_v35 = vld [vmem:[%s826_s3 + $0x20] sm:$0xff] }
  0x13   :  { %v248_v6 = vadd.s32 %v247_v4, %v245_v3  ;;  %v253_v8 = vsel %vm252_vm3, 1, %v660_v2  ;;  %vm258_vm6 = vcmp.ge.s32.totalorder %v143_v1, 30  ;;  %v256_v11 = vsel %vm255_vm5, 1, %v660_v2  ;;  %s662_s0 = smov [#allocation8]   ;;  %s463_s5 = sshll.u32 %s663_s28, 4  ;;  %s464_s5 = int_to_ptr.vmem [resolvable:$true] %s463_s5 }
  0x14   :  { %vm261_vm7 = vcmp.ge.s32.totalorder %v143_v1, 35  ;;  %v259_v13 = vsel %vm258_vm6, 1, %v660_v2  ;;  %v138_v36 = vadd.s32 8, %v721_v20  ;;  %vm144_vm11 = vcmp.ge.s32.totalorder %v721_v20, 5  ;;  %s476_s3 = sshll.u32 %s662_s0, 4  ;;  %s477_s3 = int_to_ptr.vmem [resolvable:$true] %s476_s3 }
  0x15   :  { %v251_v9 = vadd.s32 %v250_v5, %v248_v6  ;;  %v262_v16 = vsel %vm261_vm7, 1, %v660_v2  ;;  %v149_v38 = vsel %vm144_vm11, 1, %v660_v2  ;;  %vm346_vm0 = vcmask 326656  }
  0x16   :  { %499 = vmatpush.xpose.msk.msra.mxu0 %vm73_vm4, %v60_v15  ;;  %521 = vmatpush.xpose.msk.msra.mxu3 %vm73_vm4, %v60_v15  ;;  %vm155_vm12 = vcmp.ge.s32.totalorder %v138_v36, 10  ;;  %vm170_vm13 = vcmp.ge.s32.totalorder %v138_v36, 15  ;;  %v139_v45 = vadd.s32 16, %v721_v20  ;;  %v140_v47 = vadd.s32 24, %v721_v20 }
  0x17   :  { %v254_v12 = vadd.s32 %v253_v8, %v251_v9  ;;  %v160_v39 = vsel %vm155_vm12, 1, %v660_v2  ;;  %v175_v43 = vsel %vm170_vm13, 1, %v660_v2  ;;  %v141_v0 = vadd.s32 32, %v721_v20 }
  0x18   :  { %v165_v42 = vadd.s32 1, %v160_v39  ;;  %vm186_vm1 = vcmp.ge.s32.totalorder %v139_v45, 20  ;;  %vm202_vm3 = vcmp.ge.s32.totalorder %v140_v47, 25  ;;  %vm217_vm6 = vcmp.ge.s32.totalorder %v140_v47, 30  ;;  %v66_v45 = vld [vmem:[#allocation5 + $0x18] sm:$0xff]  ;;  %v64_v47 = vld [vmem:[#allocation5 + $0x8] sm:$0xff] }
  0x19   :  { %v257_v14 = vadd.s32 %v256_v11, %v254_v12  ;;  %v191_v53 = vsel %vm186_vm1, 1, %v660_v2  ;;  %v207_v55 = vsel %vm202_vm3, 1, %v660_v2  ;;  %v222_v62 = vsel %vm217_vm6, 1, %v660_v2 }
  0x1a   :  { %500 = vmatpush.xpose.msk.msra.mxu0 %vm73_vm4, %v59_v19  ;;  %522 = vmatpush.xpose.msk.msra.mxu3 %vm73_vm4, %v59_v19  ;;  %v180_v49 = vadd.s32 %v175_v43, %v165_v42  ;;  %v196_v58 = vadd.s32 3, %v191_v53  ;;  %v212_v60 = vadd.s32 4, %v207_v55 }
  0x1b   :  { %v260_v17 = vadd.s32 %v259_v13, %v257_v14 }
  0x1c   :  { %v227_v3 = vadd.s32 %v222_v62, %v212_v60 }
  0x1d   :  { %v718_v18 = vadd.s32 %v262_v16, %v260_v17 }
  0x1e   :  { %501 = vmatpush.xpose.msk.msra.mxu0 %vm73_vm4, %v58_v23  ;;  %523 = vmatpush.xpose.msk.msra.mxu3 %vm73_vm4, %v58_v23 }
  0x1f   :  { %v269_v21 = vmul.u32 5, %v718_v18  ;;  %vm264_vm15 = vcmp.ne.s32.totalorder %v149_v38, %v718_v18  ;;  %vm265_vm5 = vcmp.ne.s32.totalorder %v180_v49, %v718_v18 }
  0x21   :  { %v270_v22 = vsub.s32 %v143_v1, %v269_v21  ;;  %502 = vmatmul.msk.f32.vlgmr.msra.gmra.mxu0 %vm73_vm4, %v53_v27  ;;  %505 = vmatmul.msk.f32.vlgmr.msra.gmra.mxu3 %vm73_vm4, %v56_v28 }
  0x23   :  { %vm271_vm9 = vcmp.eq.s32.totalorder %v270_v22, %v721_v20 }
  0x24   :  { %v507_v26 = vsel %vm271_vm9, 1.0, %v661_v25  ;;  %vm233_vm9 = vcmp.ge.s32.totalorder %v141_v0, 35 }
  0x25   :  { %508 = vmatpush.msk.msra.mxu1 %vm290_vm8, %v507_v26  ;;  %vm266_vm8 = vcmp.ne.s32.totalorder %v196_v58, %v718_v18  ;;  %v238_v9 = vsel %vm233_vm9, 1, %v660_v2 }
  0x26   :  { %509 = vmatmul.msk.f32.vlgmr.msra.gmra.mxu1 %vm274_vm10, %v68_v24  ;;  %v243_v13 = vadd.s32 6, %v238_v9 }
  0x28   :  { %vm268_vm12 = vcmp.ne.s32.totalorder %v243_v13, %v718_v18 }
  0x29   :  { %503 = vmatmul.msk.f32.gmra.mxu0 %vm73_vm4, %v54_v30  ;;  %506 = vmatmul.msk.f32.gmra.mxu3 %vm73_vm4, %v57_v31 }
  0x2e   :  { %510 = vmatmul.msk.f32.gmra.mxu1 %vm274_vm10, %v69_v29 }
  0x31   :  { %504 = vmatmul.msk.f32.gmra.mxu0 %vm73_vm4, %v55_v33 }
  0x36   :  { %511 = vmatmul.msk.f32.gmra.mxu1 %vm274_vm10, %v70_v32 }
  0x3e   :  { %512 = vmatmul.msk.f32.gmra.mxu1 %vm274_vm10, %v71_v34 }
  0x46   :  { %513 = vmatmul.msk.f32.gmra.mxu1 %vm274_vm10, %v72_v35  ;;  %vm267_vm10 = vcmp.ne.s32.totalorder %v227_v3, %v718_v18 }
  0x9e   :  { %v121_v40 = vpop.f32.mrf.mxu0 }
  0x9f   :  { %v331_v41 = vmul.f32 0.125, %v121_v40 }
  0xa3   :  { %v311_v37 = vpop.f32.mrf.mxu1 }
  0xa4   :  { %vm326_vm14 = vcmp.gt.f32.partialorder %v311_v37, 0.5  ;;  %v130_v61 = vpop.f32.mrf.mxu3 }
  0xa5   :  { %v336_v44 = vsel %vm326_vm14, -1e+09, %v331_v41  ;;  %v334_v5 = vmul.f32 0.125, %v130_v61 }
  0xa6   :  { %v341_v46 = vsel %vm264_vm15, -1e+30, %v336_v44  ;;  %v124_v51 = vpop.f32.mrf.mxu0  ;;  %v67_v44 = vld [vmem:[#allocation5 + $0x20] sm:$0xff] }
  0xa7   :  { %v347_v48 = vsel %vm346_vm0, %v341_v46, -inf  ;;  %v332_v52 = vmul.f32 0.125, %v124_v51  ;;  %433 = vmatpush.msra.mxu2 %v67_v44 }
  0xa8   :  { %348 = vmax.xlane.f32.xlu0 %v347_v48  ;;  %v63_v48 = vld [vmem:[#allocation5] sm:$0xff] }
  0xa9   :  { %434 = vmatpush.msra.mxu2 %v66_v45 }
  0xab   :  { %v314_v50 = vpop.f32.mrf.mxu1 }
  0xac   :  { %vm327_vm2 = vcmp.gt.f32.partialorder %v314_v50, 0.5  ;;  %v133_v11 = vpop.f32.mrf.mxu3 }
  0xad   :  { %v337_v54 = vsel %vm327_vm2, -1e+09, %v332_v52  ;;  %v335_v15 = vmul.f32 0.125, %v133_v11 }
  0xae   :  { %v342_v56 = vsel %vm265_vm5, -1e+30, %v337_v54  ;;  %v127_v63 = vpop.f32.mrf.mxu0 }
  0xaf   :  { %v350_v57 = vsel %vm346_vm0, %v342_v56, -inf  ;;  %v333_v1 = vmul.f32 0.125, %v127_v63 }
  0xb0   :  { %351 = vmax.xlane.f32.xlu0 %v350_v57 }
  0xb3   :  { %v317_v59 = vpop.f32.mrf.mxu1 }
  0xb4   :  { %vm328_vm7 = vcmp.gt.f32.partialorder %v317_v59, 0.5 }
  0xb5   :  { %v338_v4 = vsel %vm328_vm7, -1e+09, %v333_v1 }
  0xb6   :  { %v343_v6 = vsel %vm266_vm8, -1e+30, %v338_v4 }
  0xb7   :  { %v353_v7 = vsel %vm346_vm0, %v343_v6, -inf }
  0xb8   :  { %354 = vmax.xlane.f32.xlu1 %v353_v7 }
  0xbb   :  { %v320_v8 = vpop.f32.mrf.mxu1 }
  0xbc   :  { %vm329_vm11 = vcmp.gt.f32.partialorder %v320_v8, 0.5 }
  0xbd   :  { %v339_v10 = vsel %vm329_vm11, -1e+09, %v334_v5 }
  0xbe   :  { %v344_v12 = vsel %vm267_vm10, -1e+30, %v339_v10 }
  0xbf   :  { %v356_v14 = vsel %vm346_vm0, %v344_v12, -inf }
  0xc0   :  { %357 = vmax.xlane.f32.xlu1 %v356_v14 }
  0xc3   :  { %v323_v16 = vpop.f32.mrf.mxu1 }
  0xc4   :  { %vm330_vm13 = vcmp.gt.f32.partialorder %v323_v16, 0.5 }
  0xc5   :  { %v340_v17 = vsel %vm330_vm13, -1e+09, %v335_v15 }
  0xc6   :  { %v345_v19 = vsel %vm268_vm12, -1e+30, %v340_v17 }
  0xc7   :  { %v359_v20 = vsel %vm346_vm0, %v345_v19, -inf }
  0xc8   :  { %360 = vmax.xlane.f32.xlu2 %v359_v20 }
 0x11b   :  { %v349_v21 = vpop.xlane.xlu0 %348 }
 0x11c   :  { %v362_v22 = vsub.f32 %v341_v46, %v349_v21  ;;  %v65_v46 = vld [vmem:[#allocation5 + $0x10] sm:$0xff] }
 0x11d   :  { %435 = vmatpush.msra.mxu2 %v65_v46 }
 0x11e   :  { %v367_v2 = vmul.f32 1.442695, %v362_v22 }
 0x11f   :  { %436 = vmatpush.msra.mxu2 %v64_v47 }
 0x120   :  { %532 = vpow2.f32 %v367_v2 }
 0x121   :  { %437 = vmatpush.msra.mxu2 %v63_v48 }
 0x123   :  { %v352_v23 = vpop.xlane.xlu0 %351 }
 0x124   :  { %v363_v24 = vsub.f32 %v342_v56, %v352_v23 }
 0x126   :  { %v533_v25 = vpop.eup %532  ;;  %v369_v26 = vmul.f32 1.442695, %v363_v24 }
 0x127   :  { %v377_v27 = vsel %vm346_vm0, %v533_v25, 0.0 }
 0x128   :  { %534 = vpow2.f32 %v369_v26  ;;  %378 = vadd.xlane.f32.xlu2 %v377_v27 }
 0x12b   :  { %v355_v28 = vpop.xlane.xlu1 %354 }
 0x12c   :  { %v364_v18 = vsub.f32 %v343_v6, %v355_v28 }
 0x12e   :  { %v535_v29 = vpop.eup %534  ;;  %v371_v30 = vmul.f32 1.442695, %v364_v18 }
 0x12f   :  { %v380_v31 = vsel %vm346_vm0, %v535_v29, 0.0 }
 0x130   :  { %536 = vpow2.f32 %v371_v30  ;;  %381 = vadd.xlane.f32.xlu0 %v380_v31 }
 0x133   :  { %v358_v32 = vpop.xlane.xlu1 %357 }
 0x134   :  { %v365_v33 = vsub.f32 %v344_v12, %v358_v32 }
 0x136   :  { %v537_v34 = vpop.eup %536  ;;  %v373_v35 = vmul.f32 1.442695, %v365_v33 }
 0x137   :  { %v383_v36 = vsel %vm346_vm0, %v537_v34, 0.0 }
 0x138   :  { %538 = vpow2.f32 %v373_v35  ;;  %384 = vadd.xlane.f32.xlu1 %v383_v36 }
 0x13b   :  { %v361_v37 = vpop.xlane.xlu2 %360 }
 0x13c   :  { %v366_v38 = vsub.f32 %v345_v19, %v361_v37 }
 0x13e   :  { %v375_v39 = vmul.f32 1.442695, %v366_v38  ;;  %v539_v40 = vpop.eup %538 }
 0x13f   :  { %v386_v41 = vsel %vm346_vm0, %v539_v40, 0.0 }
 0x140   :  { %540 = vpow2.f32 %v375_v39  ;;  %387 = vadd.xlane.f32.xlu2 %v386_v41 }
 0x146   :  { %v541_v42 = vpop.eup %540 }
 0x147   :  { %v389_v43 = vsel %vm346_vm0, %v541_v42, 0.0 }
 0x148   :  { %390 = vadd.xlane.f32.xlu0 %v389_v43 }
 0x19b   :  { %v379_v49 = vpop.xlane.xlu2 %378 }
 0x19c   :  { %542 = vrcp.f32 %v379_v49 }
 0x1a2   :  { %v543_v50 = vpop.eup %542 }
 0x1a3   :  { %v382_v51 = vpop.xlane.xlu0 %381  ;;  %v397_v52 = vmul.f32 %v543_v50, %v533_v25 }
 0x1a4   :  { %544 = vrcp.f32 %v382_v51 }
 0x1a5   :  { %402 = vst.msk [vmem:[#allocation8] sm:$0xff] %vm346_vm0, %v397_v52  ;;  %514 = vmatmul.msk.f32.vlgmr.msra.gmra.mxu2 %vm346_vm0, %v397_v52 }
 0x1aa   :  { %v545_v53 = vpop.eup %544 }
 0x1ab   :  { %v385_v54 = vpop.xlane.xlu1 %384  ;;  %v398_v55 = vmul.f32 %v545_v53, %v535_v29 }
 0x1ac   :  { %546 = vrcp.f32 %v385_v54 }
 0x1ad   :  { %403 = vst.msk [vmem:[#allocation8 + $0x8] sm:$0xff] %vm346_vm0, %v398_v55  ;;  %515 = vmatmul.msk.f32.gmra.mxu2 %vm346_vm0, %v398_v55 }
 0x1b2   :  { %v547_v56 = vpop.eup %546 }
 0x1b3   :  { %v388_v57 = vpop.xlane.xlu2 %387  ;;  %v399_v58 = vmul.f32 %v547_v56, %v537_v34 }
 0x1b4   :  { %548 = vrcp.f32 %v388_v57 }
 0x1b5   :  { %404 = vst.msk [vmem:[#allocation8 + $0x10] sm:$0xff] %vm346_vm0, %v399_v58  ;;  %516 = vmatmul.msk.f32.gmra.mxu2 %vm346_vm0, %v399_v58 }
 0x1ba   :  { %v549_v60 = vpop.eup %548 }
 0x1bb   :  { %v391_v59 = vpop.xlane.xlu0 %390  ;;  %v400_v61 = vmul.f32 %v549_v60, %v539_v40 }
 0x1bc   :  { %550 = vrcp.f32 %v391_v59 }
 0x1bd   :  { %405 = vst.msk [vmem:[#allocation8 + $0x18] sm:$0xff] %vm346_vm0, %v400_v61  ;;  %517 = vmatmul.msk.f32.gmra.mxu2 %vm346_vm0, %v400_v61 }
 0x1c2   :  { %v551_v62 = vpop.eup %550 }
 0x1c3   :  { %v401_v63 = vmul.f32 %v551_v62, %v541_v42 }
 0x1c5   :  { %406 = vst.msk [vmem:[#allocation8 + $0x20] sm:$0xff] %vm346_vm0, %v401_v63  ;;  %518 = vmatmul.msk.f32.gmra.mxu2 %vm346_vm0, %v401_v63 }
 0x1c6   :  { %484 = dma.vmem_to_hbm [thread:$0]  %s477_s3, 640, %s479_s25, [#allocation9], %s657_s26, %s657_s26, %s658_s27  }
 0x228   :  { %v439_v0 = vpop.f32.mrf.mxu2 }
 0x229   :  { %454 = vst.msk [vmem:[#allocation7] sm:$0xff] %vm73_vm4, %v439_v0 }
 0x230   :  { %v442_v1 = vpop.f32.mrf.mxu2 }
 0x231   :  { %455 = vst.msk [vmem:[#allocation7 + $0x8] sm:$0xff] %vm73_vm4, %v442_v1 }
 0x238   :  { %v445_v3 = vpop.f32.mrf.mxu2 }
 0x239   :  { %456 = vst.msk [vmem:[#allocation7 + $0x10] sm:$0xff] %vm73_vm4, %v445_v3 }
 0x240   :  { %v448_v4 = vpop.f32.mrf.mxu2 }
 0x241   :  { %457 = vst.msk [vmem:[#allocation7 + $0x18] sm:$0xff] %vm73_vm4, %v448_v4 }
 0x248   :  { %v451_v5 = vpop.f32.mrf.mxu2 }
 0x249   :  { %458 = vst.msk [vmem:[#allocation7 + $0x20] sm:$0xff] %vm73_vm4, %v451_v5 }
 0x24a   :  { %471 = dma.vmem_to_hbm [thread:$0]  %s464_s5, 640, %s466_s2, [#allocation4], %s657_s26, %s657_s26, %s658_s27  }
 0x24b   :  { %652 = dma.done.wait [#allocation4], 640  }
 0x24c   :  { %653 = vsyncadd [#allocation4], 4294966656 }
 0x24d   :  { %654 = dma.done.wait [#allocation9], 640  }
 0x24e   :  { %655 = vsyncadd [#allocation9], 4294966656 }
 0x24f   :  { %493 = vsyncpa [#allocation3], 1 }
 0x250   :  { %494 = vsyncpa [#allocation6], 1 }
 0x251   :  { %495 = vsyncpa [#allocation4], 1 }
 0x252   :  { %496 = vsyncpa [#allocation9], 1 }

</bundles_post_ra>
